<compile_context>
chip_gen: v7x
topology: tpu7x:2x2x1
jax: 0.10.0
libtpu: 0.0.40
codegen_flags: <defaults>
</compile_context>

<pallas_src>
import jax
import jax.numpy as jnp
from jax.experimental import pallas as pl
from jax.experimental.pallas import tpu as pltpu


def _make_stats_pool_kernel(t_len: int, eps: float, stddev: bool):
    """Kernel body closed over the true (unpadded) T length, eps, stddev flag."""
    inv_t = 1.0 / float(t_len)

    if stddev:
        def kernel(x_ref, mean_ref, std_ref, s1_ref, s2_ref):
            t = pl.program_id(1)

            @pl.when(t == 0)
            def _():
                s1_ref[...] = jnp.zeros_like(s1_ref)
                s2_ref[...] = jnp.zeros_like(s2_ref)

            x = x_ref[...].astype(jnp.float32)            # (TB, C, TT)
            s1_ref[...] += jnp.sum(x, axis=-1)            # running sum
            s2_ref[...] += jnp.sum(x * x, axis=-1)        # running sum of squares

            @pl.when(t == pl.num_programs(1) - 1)
            def _():
                mean = s1_ref[...] * inv_t
                var = s2_ref[...] * inv_t - mean * mean
                mean_ref[...] = mean.astype(mean_ref.dtype)
                std_ref[...] = jnp.sqrt(jnp.maximum(var, eps)).astype(std_ref.dtype)

        return kernel

    def kernel(x_ref, mean_ref, s1_ref):
        t = pl.program_id(1)

        @pl.when(t == 0)
        def _():
            s1_ref[...] = jnp.zeros_like(s1_ref)

        x = x_ref[...].astype(jnp.float32)
        s1_ref[...] += jnp.sum(x, axis=-1)

        @pl.when(t == pl.num_programs(1) - 1)
        def _():
            mean_ref[...] = (s1_ref[...] * inv_t).astype(mean_ref.dtype)

    return kernel


def statistics_pooling(inputs: jax.Array, *, input_dim: int, stddev: bool = True,
                       eps: float = 1e-09, t_tile: int | None = None) -> jax.Array:
    """Pallas implementation of StatisticsPooling.forward.

    inputs: (B, input_dim, T) -> (B, 2*input_dim) if stddev else (B, input_dim)
    """
    assert inputs.ndim == 3
    B, C, T = inputs.shape
    assert C == input_dim

    dtype = inputs.dtype
    itemsize = jnp.dtype(dtype).itemsize

    # Rows per grid step: sublane-dense output stores (8 for f32, 16 for bf16/fp8).
    tb = 8 if itemsize >= 4 else 16

    # T tile: ~2 MiB per input buffer, multiple of 128 lanes; if T fits, take it whole.
    if t_tile is None:
        budget_bytes = 2 << 20
        t_tile = max(128, (budget_bytes // (tb * C * itemsize)) // 128 * 128)
    tt = T if T <= t_tile else t_tile

    b_pad = pl.cdiv(B, tb) * tb
    t_pad = pl.cdiv(T, tt) * tt

    x = inputs
    if b_pad != B or t_pad != T:
        # Zero padding is exact for sum / sum-of-squares; divisor stays the real T.
        x = jnp.pad(x, ((0, b_pad - B), (0, 0), (0, t_pad - T)))

    grid = (b_pad // tb, t_pad // tt)
    n_out = 2 if stddev else 1
    kernel = _make_stats_pool_kernel(T, eps, stddev)

    in_spec = pl.BlockSpec((tb, C, tt), lambda b, t: (b, 0, t))
    out_spec = pl.BlockSpec((tb, C), lambda b, t: (b, 0))   # resident across the T axis
    out_shape = jax.ShapeDtypeStruct((b_pad, C), dtype)

    outs = pl.pallas_call(
        kernel,
        out_shape=[out_shape] * n_out,
        grid_spec=pltpu.PrefetchScalarGridSpec(
            num_scalar_prefetch=0,
            grid=grid,
            in_specs=[in_spec],
            out_specs=[out_spec] * n_out,
            scratch_shapes=[pltpu.VMEM((tb, C), jnp.float32) for _ in range(n_out)],
        ),
        compiler_params=pltpu.CompilerParams(
            dimension_semantics=("parallel", "arbitrary")),
    )(x)

    if stddev:
        mean, std = outs
        return jnp.concatenate([mean[:B], std[:B]], axis=1)
    return outs[0][:B]


def _reference(inputs, stddev=True, eps=1e-09):
    """Plain-JAX reference mirroring the PyTorch forward exactly."""
    T = inputs.shape[2]
    x = inputs.astype(jnp.float32)
    mean = jnp.sum(x, axis=2, keepdims=True) / T
    if stddev:
        var = jnp.sum((x - mean) ** 2, axis=2, keepdims=True) / T
        std = jnp.sqrt(jnp.maximum(var, eps))
        return jnp.concatenate([mean[..., 0], std[..., 0]], axis=1).astype(inputs.dtype)
    return mean[..., 0].astype(inputs.dtype)


if __name__ == "__main__":
    key = jax.random.PRNGKey(0)
    k1, k2 = jax.random.split(key, 2)

    # Case 1: small shapes consistent with the module (batch=2, input_dim=4, frames=16).
    B, C, T = 2, 4, 16
    x = jax.random.normal(k1, (B, C, T), dtype=jnp.float32)
    out = jax.block_until_ready(statistics_pooling(x, input_dim=C, stddev=True))
    ref = _reference(x, stddev=True)
    assert out.shape == (B, 2 * C), out.shape
    assert jnp.allclose(out, ref, atol=1e-5, rtol=1e-5)

    # Case 2: exercises B padding and the T-tiled accumulation path (3 T grid steps).
    B2, C2, T2 = 3, 8, 300
    x2 = jax.random.normal(k2, (B2, C2, T2), dtype=jnp.float32) + 2.0
    out2 = jax.block_until_ready(
        statistics_pooling(x2, input_dim=C2, stddev=True, t_tile=128))
    ref2 = _reference(x2, stddev=True)
    assert out2.shape == (B2, 2 * C2), out2.shape
    assert jnp.allclose(out2, ref2, atol=1e-4, rtol=1e-4)

    # Case 3: stddev=False path (mean only).
    out3 = jax.block_until_ready(statistics_pooling(x, input_dim=C, stddev=False))
    assert out3.shape == (B, C), out3.shape
    assert jnp.allclose(out3, _reference(x, stddev=False), atol=1e-5, rtol=1e-5)

    print("KERNEL_OK")
</pallas_src>

<mosaic_0001>
module attributes {stable_mosaic.version = 11 : i64} {
  func.func @kernel(%arg0: i32, %arg1: i32, %arg2: memref<8x4x16xf32, #tpu.memory_space<vmem>>, %arg3: memref<8x4xf32, #tpu.memory_space<vmem>>, %arg4: memref<8x4xf32, #tpu.memory_space<vmem>>, %arg5: memref<8x4xf32, #tpu.memory_space<vmem>>, %arg6: memref<8x4xf32, #tpu.memory_space<vmem>>) attributes {dimension_semantics = [#tpu.dimension_semantics<parallel>, #tpu.dimension_semantics<arbitrary>], iteration_bounds = array<i64: 1, 1>, scalar_prefetch = 0 : i64, scratch_operands = 2 : i64, tpu.core_type = #tpu.core_type<tc>, window_params = [{transform_indices = @transform_0, window_bounds = array<i64: 8, 4, 16>}, {transform_indices = @transform_1, window_bounds = array<i64: 8, 4>}, {transform_indices = @transform_2, window_bounds = array<i64: 8, 4>}]} {
    %c0_i32 = arith.constant 0 : i32
    %0 = arith.cmpi eq, %arg1, %c0_i32 : i32
    %1 = arith.extui %0 : i1 to i32
    %c0_i32_0 = arith.constant 0 : i32
    %2 = arith.cmpi ne, %1, %c0_i32_0 : i32
    scf.if %2 {
      %cst_14 = arith.constant 0.000000e+00 : f32
      %16 = vector.broadcast %cst_14 : f32 to vector<8x4xf32>
      %c0_15 = arith.constant 0 : index
      %c0_16 = arith.constant 0 : index
      %17 = vector.load %arg5[%c0_15, %c0_16] : memref<8x4xf32, #tpu.memory_space<vmem>>, vector<8x4xf32>
      tpu.vector_store %arg5[%c0_15, %c0_16], %16 {strides = array<i32>} : memref<8x4xf32, #tpu.memory_space<vmem>>, vector<8x4xf32>,
      %cst_17 = arith.constant 0.000000e+00 : f32
      %18 = vector.broadcast %cst_17 : f32 to vector<8x4xf32>
      %c0_18 = arith.constant 0 : index
      %c0_19 = arith.constant 0 : index
      %19 = vector.load %arg6[%c0_18, %c0_19] : memref<8x4xf32, #tpu.memory_space<vmem>>, vector<8x4xf32>
      tpu.vector_store %arg6[%c0_18, %c0_19], %18 {strides = array<i32>} : memref<8x4xf32, #tpu.memory_space<vmem>>, vector<8x4xf32>,
    } else {
    }
    %c0 = arith.constant 0 : index
    %c0_1 = arith.constant 0 : index
    %c0_2 = arith.constant 0 : index
    %3 = vector.load %arg2[%c0, %c0_1, %c0_2] : memref<8x4x16xf32, #tpu.memory_space<vmem>>, vector<8x4x16xf32>
    %c0_3 = arith.constant 0 : index
    %c0_4 = arith.constant 0 : index
    %4 = vector.load %arg5[%c0_3, %c0_4] : memref<8x4xf32, #tpu.memory_space<vmem>>, vector<8x4xf32>
    %cst = arith.constant dense<0.000000e+00> : vector<8x4xf32>
    %5 = vector.multi_reduction <add>, %3, %cst [2] : vector<8x4x16xf32> to vector<8x4xf32>
    %6 = arith.addf %4, %5 : vector<8x4xf32>
    %c0_5 = arith.constant 0 : index
    %c0_6 = arith.constant 0 : index
    %7 = vector.load %arg5[%c0_5, %c0_6] : memref<8x4xf32, #tpu.memory_space<vmem>>, vector<8x4xf32>
    tpu.vector_store %arg5[%c0_5, %c0_6], %6 {strides = array<i32>} : memref<8x4xf32, #tpu.memory_space<vmem>>, vector<8x4xf32>,
    %c0_7 = arith.constant 0 : index
    %c0_8 = arith.constant 0 : index
    %8 = vector.load %arg6[%c0_7, %c0_8] : memref<8x4xf32, #tpu.memory_space<vmem>>, vector<8x4xf32>
    %9 = arith.mulf %3, %3 : vector<8x4x16xf32>
    %cst_9 = arith.constant dense<0.000000e+00> : vector<8x4xf32>
    %10 = vector.multi_reduction <add>, %9, %cst_9 [2] : vector<8x4x16xf32> to vector<8x4xf32>
    %11 = arith.addf %8, %10 : vector<8x4xf32>
    %c0_10 = arith.constant 0 : index
    %c0_11 = arith.constant 0 : index
    %12 = vector.load %arg6[%c0_10, %c0_11] : memref<8x4xf32, #tpu.memory_space<vmem>>, vector<8x4xf32>
    tpu.vector_store %arg6[%c0_10, %c0_11], %11 {strides = array<i32>} : memref<8x4xf32, #tpu.memory_space<vmem>>, vector<8x4xf32>,
    %c0_i32_12 = arith.constant 0 : i32
    %13 = arith.cmpi eq, %arg1, %c0_i32_12 : i32
    %14 = arith.extui %13 : i1 to i32
    %c0_i32_13 = arith.constant 0 : i32
    %15 = arith.cmpi ne, %14, %c0_i32_13 : i32
    scf.if %15 {
      %c0_14 = arith.constant 0 : index
      %c0_15 = arith.constant 0 : index
      %16 = vector.load %arg5[%c0_14, %c0_15] : memref<8x4xf32, #tpu.memory_space<vmem>>, vector<8x4xf32>
      %cst_16 = arith.constant 6.250000e-02 : f32
      %17 = vector.broadcast %cst_16 : f32 to vector<8x4xf32>
      %18 = arith.mulf %16, %17 : vector<8x4xf32>
      %c0_17 = arith.constant 0 : index
      %c0_18 = arith.constant 0 : index
      %19 = vector.load %arg6[%c0_17, %c0_18] : memref<8x4xf32, #tpu.memory_space<vmem>>, vector<8x4xf32>
      %cst_19 = arith.constant 6.250000e-02 : f32
      %20 = vector.broadcast %cst_19 : f32 to vector<8x4xf32>
      %21 = arith.mulf %19, %20 : vector<8x4xf32>
      %22 = arith.mulf %18, %18 : vector<8x4xf32>
      %23 = arith.subf %21, %22 : vector<8x4xf32>
      %c0_20 = arith.constant 0 : index
      %c0_21 = arith.constant 0 : index
      %24 = vector.load %arg3[%c0_20, %c0_21] : memref<8x4xf32, #tpu.memory_space<vmem>>, vector<8x4xf32>
      tpu.vector_store %arg3[%c0_20, %c0_21], %18 {strides = array<i32>} : memref<8x4xf32, #tpu.memory_space<vmem>>, vector<8x4xf32>,
      %cst_22 = arith.constant 9.99999971E-10 : f32
      %25 = vector.broadcast %cst_22 : f32 to vector<8x4xf32>
      %26 = arith.maximumf %23, %25 : vector<8x4xf32>
      %27 = math.sqrt %26 : vector<8x4xf32>
      %c0_23 = arith.constant 0 : index
      %c0_24 = arith.constant 0 : index
      %28 = vector.load %arg4[%c0_23, %c0_24] : memref<8x4xf32, #tpu.memory_space<vmem>>, vector<8x4xf32>
      tpu.vector_store %arg4[%c0_23, %c0_24], %27 {strides = array<i32>} : memref<8x4xf32, #tpu.memory_space<vmem>>, vector<8x4xf32>,
    } else {
    }
    return
  }
  func.func @transform_0(%arg0: i32, %arg1: i32) -> (i32, i32, i32) {
    %c0_i32 = arith.constant 0 : i32
    %c0_i32_0 = arith.constant 0 : i32
    return %arg0, %c0_i32, %arg1 : i32, i32, i32
  }
  func.func @transform_1(%arg0: i32, %arg1: i32) -> (i32, i32) {
    %c0_i32 = arith.constant 0 : i32
    %c0_i32_0 = arith.constant 0 : i32
    return %arg0, %c0_i32 : i32, i32
  }
  func.func @transform_2(%arg0: i32, %arg1: i32) -> (i32, i32) {
    %c0_i32 = arith.constant 0 : i32
    %c0_i32_0 = arith.constant 0 : i32
    return %arg0, %c0_i32 : i32, i32
  }
}

</mosaic_0001>

<bundles_post_ra>
// kernel: tpu_custom_call.1
= control target key start
LH: loop header
LB: loop body
LE: loop exit
PB: predicated region body
PF: predicated region fallthrough
CT: control target
= control target key end

     0   :  { %8 = vsyncpa [#allocation5], 0  ;;  %s266_s9 = smov [#allocation4]   ;;  %s339_s0 = inlined_call_operand.hbm [shape: f32[8,4,16], index: 0, kind: input, shape index: {}]   ;;  %s340_s1 = inlined_call_operand.vmem [shape: f32[8,4], index: 1, kind: output, shape index: {0}]   ;;  %s341_s2 = inlined_call_operand.vmem [shape: f32[8,4], index: 2, kind: output, shape index: {1}]  }
   0x1   :  { %s14_s10 = sshll.u32 %s266_s9, 4  ;;  %s242_s13 = scalar_lea.hbm %s339_s0, 512  ;;  %s15_s10 = int_to_ptr.vmem [resolvable:$true] %s14_s10 }
   0x2   :  { %p243_p0 = scmp.ne.s32.totalorder %s339_s0, %s242_s13  ;;  %p246_p1 = scmp.lt.u32.totalorder %s242_s13, %s339_s0 }
   0x4   :  { %p248_p2 = pnand %p246_p1, %p243_p0 }
   0x6   :  { %251 = shalt.err (!%p248_p2)
}
   0x7   :  { %s252_s18 = scalar_lea.vmem %s15_s10, 512  ;;  %p257_p4 = scmp.lt.s32.totalorder %s15_s10, %s15_s10 }
   0x8   :  { %p253_p3 = scmp.ne.s32.totalorder %s15_s10, %s252_s18  ;;  %p258_p5 = scmp.lt.s32.totalorder %s252_s18, %s252_s18 }
   0xa   :  { %p259_p6 = por %p258_p5, %p257_p4 }
   0xc   :  { %p260_p7 = pnand %p259_p6, %p253_p3 }
   0xe   :  { %263 = shalt.err (!%p260_p7)
}
   0xf   :  { %s267_s19 = smov 64   ;;  %s268_s20 = smov 4  }
  0x10   :  { %20 = dma.hbm_to_vmem [thread:$0]  %s339_s0, 512, %s15_s10, [#allocation5], %s267_s19, %s267_s19, %s268_s20  }
  0x11   :  { %264 = dma.done.wait [#allocation5], 512  }
  0x12   :  { %265 = vsyncadd [#allocation5], 4294966784  ;;  %vm40_vm0 = vcmask 125952   ;;  %v33_v0 = vld [vmem:[#allocation4 + $0x8] sm:$0xf]  ;;  %vm28_vm1 = vcmask 31744   ;;  %v73_v35 = vlaneseq }
  0x13   :  { %v31_v1 = vld [vmem:[#allocation4] sm:$0xf]  ;;  %v34_v2 = vld [vmem:[#allocation4 + $0xc] sm:$0xf]  ;;  %v47_v3 = vsel %vm40_vm0, %v33_v0, 0.0  ;;  %v128_v10 = vmul.f32 %v33_v0, %v33_v0  ;;  %v269_v32 = vmov 0.0  }
  0x14   :  { %v41_v4 = vsel %vm40_vm0, %v31_v1, 0.0  ;;  %v32_v5 = vld [vmem:[#allocation4 + $0x4] sm:$0xf]  ;;  %48 = vadd.xlane.f32.xlu1 %v47_v3  ;;  %v126_v6 = vmul.f32 %v31_v1, %v31_v1  ;;  %v50_v7 = vsel %vm40_vm0, %v34_v2, 0.0  ;;  %v35_v13 = vld [vmem:[#allocation4 + $0x10] sm:$0xf]  ;;  %v129_v16 = vmul.f32 %v34_v2, %v34_v2 }
  0x15   :  { %42 = vadd.xlane.f32.xlu0 %v41_v4  ;;  %v44_v8 = vsel %vm40_vm0, %v32_v5, 0.0  ;;  %v127_v9 = vmul.f32 %v32_v5, %v32_v5  ;;  %v140_v14 = vsel %vm40_vm0, %v128_v10, 0.0  ;;  %v53_v15 = vsel %vm40_vm0, %v35_v13, 0.0  ;;  %v36_v17 = vld [vmem:[#allocation4 + $0x14] sm:$0xf]  ;;  %29 = vst.msk [vmem:[#allocation2] sm:$0xff] %vm28_vm1, %v269_v32 }
  0x16   :  { %v134_v12 = vsel %vm40_vm0, %v126_v6, 0.0  ;;  %v143_v18 = vsel %vm40_vm0, %v129_v16, 0.0  ;;  %v56_v19 = vsel %vm40_vm0, %v36_v17, 0.0  ;;  %v130_v20 = vmul.f32 %v35_v13, %v35_v13  ;;  %v37_v21 = vld [vmem:[#allocation4 + $0x18] sm:$0xf]  ;;  %30 = vst.msk [vmem:[#allocation3] sm:$0xff] %vm28_vm1, %v269_v32 }
  0x17   :  { %v137_v11 = vsel %vm40_vm0, %v127_v9, 0.0  ;;  %v59_v23 = vsel %vm40_vm0, %v37_v21, 0.0  ;;  %v131_v24 = vmul.f32 %v36_v17, %v36_v17  ;;  %v38_v25 = vld [vmem:[#allocation4 + $0x1c] sm:$0xf]  ;;  %v132_v28 = vmul.f32 %v37_v21, %v37_v21 }
  0x18   :  { %51 = vadd.xlane.f32.xlu1 %v50_v7  ;;  %v146_v22 = vsel %vm40_vm0, %v130_v20, 0.0  ;;  %v62_v27 = vsel %vm40_vm0, %v38_v25, 0.0  ;;  %v133_v29 = vmul.f32 %v38_v25, %v38_v25  ;;  %v74_v38 = vand.u32 127, %v73_v35 }
  0x19   :  { %45 = vadd.xlane.f32.xlu0 %v44_v8  ;;  %v149_v26 = vsel %vm40_vm0, %v131_v24, 0.0  ;;  %v152_v30 = vsel %vm40_vm0, %v132_v28, 0.0  ;;  %v76_v39 = vshrl.u32 %v73_v35, 7  ;;  %vm107_vm2 = vcmask 1041409  }
  0x1a   :  { %v155_v31 = vsel %vm40_vm0, %v133_v29, 0.0  ;;  %vm109_vm3 = vcmask 1042434   ;;  %vm111_vm4 = vcmask 1043459   ;;  %vm113_vm5 = vcmask 1044484  }
  0x1b   :  { %v77_v42 = vsub.s32 %v74_v38, %v76_v39  ;;  %vm115_vm6 = vcmask 1045509   ;;  %vm117_vm7 = vcmask 1046534   ;;  %vm119_vm8 = vcmask 1047559  }
  0x1c   :  { %138 = vadd.xlane.f32.xlu1 %v137_v11  ;;  %v39_v4 = vld [vmem:[#allocation2] sm:$0xff] }
  0x1d   :  { %135 = vadd.xlane.f32.xlu0 %v134_v12 }
  0x20   :  { %141 = vadd.xlane.f32.xlu1 %v140_v14 }
  0x21   :  { %54 = vadd.xlane.f32.xlu0 %v53_v15 }
  0x24   :  { %144 = vadd.xlane.f32.xlu1 %v143_v18 }
  0x25   :  { %57 = vadd.xlane.f32.xlu0 %v56_v19  ;;  %v125_v19 = vld [vmem:[#allocation3] sm:$0xff] }
  0x28   :  { %147 = vadd.xlane.f32.xlu1 %v146_v22 }
  0x29   :  { %60 = vadd.xlane.f32.xlu0 %v59_v23 }
  0x2c   :  { %150 = vadd.xlane.f32.xlu1 %v149_v26 }
  0x2d   :  { %63 = vadd.xlane.f32.xlu0 %v62_v27 }
  0x30   :  { %156 = vadd.xlane.f32.xlu1 %v155_v31 }
  0x31   :  { %153 = vadd.xlane.f32.xlu0 %v152_v30 }
  0xa1   :  { %v49_v33 = vpop.xlane.xlu1 %48 }
  0xa2   :  { %v43_v34 = vpop.xlane.xlu0 %42  ;;  %v86_v50 = vrot.slane %v49_v33, %v77_v42 }
  0xa3   :  { %v78_v46 = vrot.slane %v43_v34, %v77_v42 }
  0xa5   :  { %v52_v36 = vpop.xlane.xlu1 %51 }
  0xa6   :  { %v46_v37 = vpop.xlane.xlu0 %45  ;;  %v90_v51 = vrot.slane %v52_v36, %v77_v42 }
  0xa7   :  { %v82_v45 = vrot.slane %v46_v37, %v77_v42 }
  0xa9   :  { %v139_v40 = vpop.xlane.xlu1 %138  ;;  %v108_v49 = vsel %vm107_vm2, %v82_v45, %v78_v46 }
  0xaa   :  { %v136_v41 = vpop.xlane.xlu0 %135  ;;  %v110_v52 = vsel %vm109_vm3, %v86_v50, %v108_v49  ;;  %v173_v57 = vrot.slane %v139_v40, %v77_v42 }
  0xab   :  { %v169_v58 = vrot.slane %v136_v41, %v77_v42  ;;  %v112_v61 = vsel %vm111_vm4, %v90_v51, %v110_v52 }
  0xad   :  { %v142_v43 = vpop.xlane.xlu1 %141  ;;  %v198_v6 = vsel %vm107_vm2, %v173_v57, %v169_v58 }
  0xae   :  { %v55_v44 = vpop.xlane.xlu0 %54  ;;  %v177_v60 = vrot.slane %v142_v43, %v77_v42 }
  0xaf   :  { %v94_v53 = vrot.slane %v55_v44, %v77_v42 }
  0xb0   :  { %v199_v9 = vsel %vm109_vm3, %v177_v60, %v198_v6 }
  0xb1   :  { %v145_v47 = vpop.xlane.xlu1 %144  ;;  %v114_v62 = vsel %vm113_vm5, %v94_v53, %v112_v61 }
  0xb2   :  { %v58_v48 = vpop.xlane.xlu0 %57  ;;  %v181_v63 = vrot.slane %v145_v47, %v77_v42 }
  0xb3   :  { %v98_v56 = vrot.slane %v58_v48, %v77_v42 }
  0xb4   :  { %v200_v11 = vsel %vm111_vm4, %v181_v63, %v199_v9 }
  0xb5   :  { %v148_v54 = vpop.xlane.xlu1 %147  ;;  %v116_v2 = vsel %vm115_vm6, %v98_v56, %v114_v62 }
  0xb6   :  { %v61_v55 = vpop.xlane.xlu0 %60  ;;  %v185_v3 = vrot.slane %v148_v54, %v77_v42 }
  0xb7   :  { %v102_v59 = vrot.slane %v61_v55, %v77_v42 }
  0xb8   :  { %v201_v15 = vsel %vm113_vm5, %v185_v3, %v200_v11 }
  0xb9   :  { %v151_v0 = vpop.xlane.xlu1 %150  ;;  %v118_v7 = vsel %vm117_vm7, %v102_v59, %v116_v2 }
  0xba   :  { %v64_v1 = vpop.xlane.xlu0 %63  ;;  %v189_v8 = vrot.slane %v151_v0, %v77_v42 }
  0xbb   :  { %v106_v5 = vrot.slane %v64_v1, %v77_v42 }
  0xbc   :  { %v202_v18 = vsel %vm115_vm6, %v189_v8, %v201_v15 }
  0xbd   :  { %v120_v10 = vsel %vm119_vm8, %v106_v5, %v118_v7  ;;  %v157_v14 = vpop.xlane.xlu1 %156 }
  0xbe   :  { %v122_v12 = vadd.f32 %v120_v10, %v39_v4  ;;  %v154_v13 = vpop.xlane.xlu0 %153  ;;  %v197_v17 = vrot.slane %v157_v14, %v77_v42 }
  0xbf   :  { %v193_v16 = vrot.slane %v154_v13, %v77_v42 }
  0xc0   :  { %124 = vst.msk [vmem:[#allocation2] sm:$0xff] %vm28_vm1, %v122_v12 }
  0xc1   :  { %v203_v20 = vsel %vm117_vm7, %v193_v16, %v202_v18 }
  0xc2   :  { %v204_v21 = vsel %vm119_vm8, %v197_v17, %v203_v20 }
  0xc3   :  { %v206_v22 = vadd.f32 %v204_v21, %v125_v19 }
  0xc5   :  { %207 = vst.msk [vmem:[#allocation3] sm:$0xff] %vm28_vm1, %v206_v22 }
  0xc7   :  { %v211_v23 = vld [vmem:[#allocation2] sm:$0xff] }
  0xc8   :  { %v212_v24 = vmul.f32 0.0625, %v211_v23 }
  0xca   :  { %217 = vst.msk [vmem:[%s340_s1] sm:$0xff] %vm28_vm1, %v212_v24  ;;  %v215_v26 = vmul.f32 %v212_v24, %v212_v24 }
  0xcc   :  { %v213_v25 = vld [vmem:[#allocation3] sm:$0xff] }
  0xcd   :  { %v214_v27 = vmul.f32 0.0625, %v213_v25 }
  0xcf   :  { %v216_v28 = vsub.f32 %v214_v27, %v215_v26 }
  0xd1   :  { %v218_v29 = vmax.f32 %v216_v28, 1e-09 }
  0xd3   :  { %240 = vrsqrt.f32 %v218_v29  ;;  %vm221_vm9 = vcmp.eq.f32.partialorder %v218_v29, inf  ;;  %v224_v32 = vand.u32 2147483648, %v218_v29  ;;  %vm223_vm10 = vcmp.eq.f32.partialorder %v218_v29, 0.0 }
  0xdd   :  { %v241_v30 = vpop.eup %240 }
  0xde   :  { %v220_v31 = vmul.f32 %v241_v30, %v218_v29 }
  0xe0   :  { %v222_v33 = vsel %vm221_vm9, %v218_v29, %v220_v31 }
  0xe1   :  { %v225_v34 = vsel %vm223_vm10, %v224_v32, %v222_v33 }
  0xe2   :  { %226 = vst.msk [vmem:[%s341_s2] sm:$0xff] %vm28_vm1, %v225_v34 }
  0xe3   :  { %235 = vsyncpa [#allocation5], 1 }

</bundles_post_ra>
